<compile_context>
chip_gen: v7x
topology: tpu7x:2x2x1
jax: 0.10.0
libtpu: 0.0.40
codegen_flags: <defaults>
</compile_context>

<pallas_src>
import jax
import jax.numpy as jnp
from jax.experimental import pallas as pl
from jax.experimental.pallas import tpu as pltpu


def _round_up(x, m):
    return ((x + m - 1) // m) * m


def _cond_embed_kernel(c_ref, w_ref, b_ref, o_ref):
    # c_ref: (TM, L)  w_ref: (L, D)  b_ref: (1, D)  o_ref: (TM, D)
    c = c_ref[...]
    w = w_ref[...]
    L = c.shape[1]  # static (10)

    # Start the accumulator from the bias, broadcast to the output tile.
    acc = jnp.broadcast_to(b_ref[...], o_ref.shape).astype(jnp.float32)

    # L static VPU FMAs instead of a padded K=10 MXU matmul.
    for k in range(L):  # unrolled at trace time
        acc = acc + c[:, k:k + 1] * w[k:k + 1, :]

    o_ref[...] = jnp.maximum(acc, 0.0).astype(o_ref.dtype)


def cond_embed_forward(c, weight, bias, *, block_m=256):
    """c: (B, L) f32, weight: (L, D) f32 (= W_pt.T), bias: (D,) f32 -> (B, D) f32."""
    B, L = c.shape
    L2, D = weight.shape
    assert L == L2 and bias.shape == (D,)

    # Batch tile: multiple of 8, capped at block_m; pad B so every block is full
    # (padded rows are sliced off after the call).
    tm = min(block_m, _round_up(B, 8))
    b_pad = _round_up(B, tm)
    if b_pad != B:
        c = jnp.pad(c, ((0, b_pad - B), (0, 0)))
    bias2d = bias.reshape(1, D)

    grid = (b_pad // tm,)
    cost = pl.CostEstimate(
        flops=2 * b_pad * L * D,
        transcendentals=0,
        bytes_accessed=4 * (b_pad * L + L * D + D + b_pad * D),
    )

    out = pl.pallas_call(
        _cond_embed_kernel,
        out_shape=jax.ShapeDtypeStruct((b_pad, D), jnp.float32),
        grid=grid,
        in_specs=[
            pl.BlockSpec((tm, L), lambda i: (i, 0)),   # streamed per batch tile
            pl.BlockSpec((L, D), lambda i: (0, 0)),    # weight resident in VMEM
            pl.BlockSpec((1, D), lambda i: (0, 0)),    # bias resident in VMEM
        ],
        out_specs=pl.BlockSpec((tm, D), lambda i: (i, 0)),
        compiler_params=pltpu.CompilerParams(
            dimension_semantics=("parallel",),  # v7x: shard batch over both TCs
        ),
        cost_estimate=cost,
    )(c, weight, bias2d)

    return out[:B] if b_pad != B else out


if __name__ == "__main__":
    label_num = 10
    cond_embed_dim = 256
    batch = 8

    key = jax.random.PRNGKey(0)
    k_c, k_w, k_b = jax.random.split(key, 3)

    # Deterministic parameter init (uniform like torch Linear: bound = 1/sqrt(fan_in)).
    bound = 1.0 / jnp.sqrt(jnp.float32(label_num))
    weight = jax.random.uniform(k_w, (label_num, cond_embed_dim),
                                dtype=jnp.float32, minval=-bound, maxval=bound)
    bias = jax.random.uniform(k_b, (cond_embed_dim,),
                              dtype=jnp.float32, minval=-bound, maxval=bound)

    # Example conditioning input, shape (batch, label_num).
    c = jax.random.normal(k_c, (batch, label_num), dtype=jnp.float32)

    out = cond_embed_forward(c, weight, bias)
    out = jax.block_until_ready(out)

    # Reference check in plain JAX.
    ref = jnp.maximum(c @ weight + bias, 0.0)
    assert out.shape == (batch, cond_embed_dim)
    assert jnp.allclose(out, ref, atol=1e-5, rtol=1e-5)

    print("KERNEL_OK")
</pallas_src>

<mosaic_0001>
module attributes {stable_mosaic.version = 11 : i64} {
  func.func @_cond_embed_kernel(%arg0: i32, %arg1: memref<8x10xf32, #tpu.memory_space<vmem>>, %arg2: memref<10x256xf32, #tpu.memory_space<vmem>>, %arg3: memref<1x256xf32, #tpu.memory_space<vmem>>, %arg4: memref<8x256xf32, #tpu.memory_space<vmem>>) attributes {dimension_semantics = [#tpu.dimension_semantics<parallel>], iteration_bounds = array<i64: 1>, scalar_prefetch = 0 : i64, scratch_operands = 0 : i64, tpu.core_type = #tpu.core_type<tc>, window_params = [{transform_indices = @transform_0, window_bounds = array<i64: 8, 10>}, {pipeline_mode = #tpu.pipeline_mode<synchronous>, transform_indices = @transform_1, window_bounds = array<i64: 10, 256>}, {pipeline_mode = #tpu.pipeline_mode<synchronous>, transform_indices = @transform_2, window_bounds = array<i64: 1, 256>}, {transform_indices = @transform_3, window_bounds = array<i64: 8, 256>}]} {
    %c0 = arith.constant 0 : index
    %c0_0 = arith.constant 0 : index
    %0 = vector.load %arg1[%c0, %c0_0] : memref<8x10xf32, #tpu.memory_space<vmem>>, vector<8x10xf32>
    %c0_1 = arith.constant 0 : index
    %c0_2 = arith.constant 0 : index
    %1 = vector.load %arg2[%c0_1, %c0_2] : memref<10x256xf32, #tpu.memory_space<vmem>>, vector<10x256xf32>
    %c0_3 = arith.constant 0 : index
    %c0_4 = arith.constant 0 : index
    %2 = vector.load %arg3[%c0_3, %c0_4] : memref<1x256xf32, #tpu.memory_space<vmem>>, vector<1x256xf32>
    %3 = vector.shape_cast %2 : vector<1x256xf32> to vector<1x256xf32>
    %4 = vector.broadcast %3 : vector<1x256xf32> to vector<8x256xf32>
    %5 = vector.extract_strided_slice %0 {offsets = [0, 0], sizes = [8, 1], strides = [1, 1]} : vector<8x10xf32> to vector<8x1xf32>
    %6 = vector.extract_strided_slice %1 {offsets = [0, 0], sizes = [1, 256], strides = [1, 1]} : vector<10x256xf32> to vector<1x256xf32>
    %7 = vector.broadcast %5 : vector<8x1xf32> to vector<8x256xf32>
    %8 = vector.broadcast %6 : vector<1x256xf32> to vector<8x256xf32>
    %9 = arith.mulf %7, %8 : vector<8x256xf32>
    %10 = arith.addf %4, %9 : vector<8x256xf32>
    %11 = vector.extract_strided_slice %0 {offsets = [0, 1], sizes = [8, 1], strides = [1, 1]} : vector<8x10xf32> to vector<8x1xf32>
    %12 = vector.extract_strided_slice %1 {offsets = [1, 0], sizes = [1, 256], strides = [1, 1]} : vector<10x256xf32> to vector<1x256xf32>
    %13 = vector.broadcast %11 : vector<8x1xf32> to vector<8x256xf32>
    %14 = vector.broadcast %12 : vector<1x256xf32> to vector<8x256xf32>
    %15 = arith.mulf %13, %14 : vector<8x256xf32>
    %16 = arith.addf %10, %15 : vector<8x256xf32>
    %17 = vector.extract_strided_slice %0 {offsets = [0, 2], sizes = [8, 1], strides = [1, 1]} : vector<8x10xf32> to vector<8x1xf32>
    %18 = vector.extract_strided_slice %1 {offsets = [2, 0], sizes = [1, 256], strides = [1, 1]} : vector<10x256xf32> to vector<1x256xf32>
    %19 = vector.broadcast %17 : vector<8x1xf32> to vector<8x256xf32>
    %20 = vector.broadcast %18 : vector<1x256xf32> to vector<8x256xf32>
    %21 = arith.mulf %19, %20 : vector<8x256xf32>
    %22 = arith.addf %16, %21 : vector<8x256xf32>
    %23 = vector.extract_strided_slice %0 {offsets = [0, 3], sizes = [8, 1], strides = [1, 1]} : vector<8x10xf32> to vector<8x1xf32>
    %24 = vector.extract_strided_slice %1 {offsets = [3, 0], sizes = [1, 256], strides = [1, 1]} : vector<10x256xf32> to vector<1x256xf32>
    %25 = vector.broadcast %23 : vector<8x1xf32> to vector<8x256xf32>
    %26 = vector.broadcast %24 : vector<1x256xf32> to vector<8x256xf32>
    %27 = arith.mulf %25, %26 : vector<8x256xf32>
    %28 = arith.addf %22, %27 : vector<8x256xf32>
    %29 = vector.extract_strided_slice %0 {offsets = [0, 4], sizes = [8, 1], strides = [1, 1]} : vector<8x10xf32> to vector<8x1xf32>
    %30 = vector.extract_strided_slice %1 {offsets = [4, 0], sizes = [1, 256], strides = [1, 1]} : vector<10x256xf32> to vector<1x256xf32>
    %31 = vector.broadcast %29 : vector<8x1xf32> to vector<8x256xf32>
    %32 = vector.broadcast %30 : vector<1x256xf32> to vector<8x256xf32>
    %33 = arith.mulf %31, %32 : vector<8x256xf32>
    %34 = arith.addf %28, %33 : vector<8x256xf32>
    %35 = vector.extract_strided_slice %0 {offsets = [0, 5], sizes = [8, 1], strides = [1, 1]} : vector<8x10xf32> to vector<8x1xf32>
    %36 = vector.extract_strided_slice %1 {offsets = [5, 0], sizes = [1, 256], strides = [1, 1]} : vector<10x256xf32> to vector<1x256xf32>
    %37 = vector.broadcast %35 : vector<8x1xf32> to vector<8x256xf32>
    %38 = vector.broadcast %36 : vector<1x256xf32> to vector<8x256xf32>
    %39 = arith.mulf %37, %38 : vector<8x256xf32>
    %40 = arith.addf %34, %39 : vector<8x256xf32>
    %41 = vector.extract_strided_slice %0 {offsets = [0, 6], sizes = [8, 1], strides = [1, 1]} : vector<8x10xf32> to vector<8x1xf32>
    %42 = vector.extract_strided_slice %1 {offsets = [6, 0], sizes = [1, 256], strides = [1, 1]} : vector<10x256xf32> to vector<1x256xf32>
    %43 = vector.broadcast %41 : vector<8x1xf32> to vector<8x256xf32>
    %44 = vector.broadcast %42 : vector<1x256xf32> to vector<8x256xf32>
    %45 = arith.mulf %43, %44 : vector<8x256xf32>
    %46 = arith.addf %40, %45 : vector<8x256xf32>
    %47 = vector.extract_strided_slice %0 {offsets = [0, 7], sizes = [8, 1], strides = [1, 1]} : vector<8x10xf32> to vector<8x1xf32>
    %48 = vector.extract_strided_slice %1 {offsets = [7, 0], sizes = [1, 256], strides = [1, 1]} : vector<10x256xf32> to vector<1x256xf32>
    %49 = vector.broadcast %47 : vector<8x1xf32> to vector<8x256xf32>
    %50 = vector.broadcast %48 : vector<1x256xf32> to vector<8x256xf32>
    %51 = arith.mulf %49, %50 : vector<8x256xf32>
    %52 = arith.addf %46, %51 : vector<8x256xf32>
    %53 = vector.extract_strided_slice %0 {offsets = [0, 8], sizes = [8, 1], strides = [1, 1]} : vector<8x10xf32> to vector<8x1xf32>
    %54 = vector.extract_strided_slice %1 {offsets = [8, 0], sizes = [1, 256], strides = [1, 1]} : vector<10x256xf32> to vector<1x256xf32>
    %55 = vector.broadcast %53 : vector<8x1xf32> to vector<8x256xf32>
    %56 = vector.broadcast %54 : vector<1x256xf32> to vector<8x256xf32>
    %57 = arith.mulf %55, %56 : vector<8x256xf32>
    %58 = arith.addf %52, %57 : vector<8x256xf32>
    %59 = vector.extract_strided_slice %0 {offsets = [0, 9], sizes = [8, 1], strides = [1, 1]} : vector<8x10xf32> to vector<8x1xf32>
    %60 = vector.extract_strided_slice %1 {offsets = [9, 0], sizes = [1, 256], strides = [1, 1]} : vector<10x256xf32> to vector<1x256xf32>
    %61 = vector.broadcast %59 : vector<8x1xf32> to vector<8x256xf32>
    %62 = vector.broadcast %60 : vector<1x256xf32> to vector<8x256xf32>
    %63 = arith.mulf %61, %62 : vector<8x256xf32>
    %64 = arith.addf %58, %63 : vector<8x256xf32>
    %cst = arith.constant 0.000000e+00 : f32
    %65 = vector.broadcast %cst : f32 to vector<8x256xf32>
    %66 = arith.maximumf %64, %65 : vector<8x256xf32>
    %c0_5 = arith.constant 0 : index
    %c0_6 = arith.constant 0 : index
    %67 = vector.load %arg4[%c0_5, %c0_6] : memref<8x256xf32, #tpu.memory_space<vmem>>, vector<8x256xf32>
    tpu.vector_store %arg4[%c0_5, %c0_6], %66 {strides = array<i32>} : memref<8x256xf32, #tpu.memory_space<vmem>>, vector<8x256xf32>,
    return
  }
  func.func @transform_0(%arg0: i32) -> (i32, i32) {
    %c0_i32 = arith.constant 0 : i32
    %c0_i32_0 = arith.constant 0 : i32
    return %arg0, %c0_i32 : i32, i32
  }
  func.func @transform_1(%arg0: i32) -> (i32, i32) {
    %c0_i32 = arith.constant 0 : i32
    %c0_i32_0 = arith.constant 0 : i32
    %c0_i32_1 = arith.constant 0 : i32
    return %c0_i32, %c0_i32_0 : i32, i32
  }
  func.func @transform_2(%arg0: i32) -> (i32, i32) {
    %c0_i32 = arith.constant 0 : i32
    %c0_i32_0 = arith.constant 0 : i32
    %c0_i32_1 = arith.constant 0 : i32
    return %c0_i32, %c0_i32_0 : i32, i32
  }
  func.func @transform_3(%arg0: i32) -> (i32, i32) {
    %c0_i32 = arith.constant 0 : i32
    %c0_i32_0 = arith.constant 0 : i32
    return %arg0, %c0_i32 : i32, i32
  }
}

</mosaic_0001>

<bundles_post_ra>
// kernel: tpu_custom_call.1
= control target key start
LH: loop header
LB: loop body
LE: loop exit
PB: predicated region body
PF: predicated region fallthrough
CT: control target
= control target key end

     0   :  { %8 = vsyncpa [#allocation3], 0  ;;  %s432_s0 = inlined_call_operand.hbm [shape: f32[8,10], index: 0, kind: input, shape index: {}]   ;;  %s433_s1 = inlined_call_operand.hbm [shape: f32[10,256], index: 1, kind: input, shape index: {}]   ;;  %s434_s2 = inlined_call_operand.vmem [shape: f32[1,256], index: 2, kind: input, shape index: {}]   ;;  %s435_s3 = inlined_call_operand.hbm [shape: f32[8,256], index: 3, kind: output, shape index: {}]  }
   0x1   :  { %9 = vsyncpa [#allocation6], 0 }
   0x2   :  { %10 = vsyncpa [#allocation4], 0  ;;  %s337_s12 = smov [#allocation2]   ;;  %s338_s14 = smov [#allocation5]  }
   0x3   :  { %s17_s13 = sshll.u32 %s337_s12, 4  ;;  %s26_s15 = sshll.u32 %s338_s14, 4  ;;  %s18_s13 = int_to_ptr.vmem [resolvable:$true] %s17_s13  ;;  %s372_s15 = int_to_ptr.vmem [resolvable:$true] %s26_s15 }
   0x4   :  { %s265_s18 = scalar_lea.hbm %s432_s0, 128 }
   0x5   :  { %p266_p0 = scmp.ne.s32.totalorder %s432_s0, %s265_s18  ;;  %p269_p1 = scmp.lt.u32.totalorder %s265_s18, %s432_s0 }
   0x7   :  { %p271_p2 = pnand %p269_p1, %p266_p0 }
   0x9   :  { %274 = shalt.err (!%p271_p2)
}
   0xa   :  { %s275_s23 = scalar_lea.vmem %s18_s13, 128  ;;  %p280_p4 = scmp.lt.s32.totalorder %s18_s13, %s18_s13 }
   0xb   :  { %p276_p3 = scmp.ne.s32.totalorder %s18_s13, %s275_s23  ;;  %p281_p5 = scmp.lt.s32.totalorder %s275_s23, %s275_s23 }
   0xd   :  { %p282_p6 = por %p281_p5, %p280_p4 }
   0xf   :  { %p283_p7 = pnand %p282_p6, %p276_p3 }
  0x11   :  { %286 = shalt.err (!%p283_p7)
}
  0x12   :  { %20 = dma.hbm_to_vmem [thread:$0]  %s432_s0, 128, %s18_s13, [#allocation3]  }
  0x13   :  { %s287_s28 = scalar_lea.hbm %s433_s1, 512 }
  0x14   :  { %p288_p8 = scmp.ne.s32.totalorder %s433_s1, %s287_s28  ;;  %p291_p9 = scmp.lt.u32.totalorder %s287_s28, %s433_s1 }
  0x16   :  { %p293_p10 = pnand %p291_p9, %p288_p8 }
  0x18   :  { %296 = shalt.err (!%p293_p10)
}
  0x19   :  { %s297_s6 = scalar_lea.vmem %s372_s15, 512  ;;  %p302_p12 = scmp.lt.s32.totalorder %s372_s15, %s372_s15 }
  0x1a   :  { %p298_p11 = scmp.ne.s32.totalorder %s372_s15, %s297_s6  ;;  %p303_p13 = scmp.lt.s32.totalorder %s297_s6, %s297_s6 }
  0x1c   :  { %p304_p0 = por %p303_p13, %p302_p12 }
  0x1e   :  { %p305_p1 = pnand %p304_p0, %p298_p11 }
  0x20   :  { %308 = shalt.err (!%p305_p1)
}
  0x21   :  { %s339_s0 = smov 256   ;;  %s340_s7 = smov 16  }
  0x22   :  { %32 = dma.hbm_to_vmem [thread:$0]  %s433_s1, 512, %s372_s15, [#allocation6], %s339_s0, %s339_s0, %s340_s7  }
  0x23   :  { %331 = dma.done.wait [#allocation3], 128  }
  0x24   :  { %332 = vsyncadd [#allocation3], 4294967168 }
  0x25   :  { %333 = dma.done.wait [#allocation6], 512  }
  0x26   :  { %334 = vsyncadd [#allocation6], 4294966784  ;;  %v341_v0 = vmov 2   ;;  %v342_v1 = vmov 0   ;;  %v41_v2 = vld [vmem:[#allocation2] sm:$0xff]  ;;  %v343_v3 = vmov 3   ;;  %v48_v11 = vlaneseq }
  0x27   :  { %256 = vset.pattern.permute.xlu1 %v341_v0  ;;  %254 = vset.pattern.permute.xlu0 %v342_v1  ;;  %v344_v4 = vmov 1   ;;  %v345_v5 = vmov 4   ;;  %v346_v6 = vmov 5   ;;  %v347_v7 = vmov 6   ;;  %v42_v14 = vld [vmem:[#allocation5] sm:$0xff]  ;;  %v43_v15 = vld [vmem:[#allocation5 + $0x8] sm:$0xff] }
  0x28   :  { %92 = vperm.xlu1 %256, %v41_v2   ;;  %60 = vperm.xlu0 %254, %v41_v2   ;;  %v348_v8 = vmov 8   ;;  %v349_v9 = vmov 7   ;;  %v350_v10 = vmov 9   ;;  %v49_v12 = vshrl.u32 %v48_v11, 7  ;;  %v46_v17 = vld [vmem:[%s434_s2] sm:$0x3] }
  0x29   :  { %s351_s2 = smov [#allocation7]  }
  0x2a   :  { %v403_v13 = vsub.s32 0, %v49_v12  ;;  %v405_v16 = vsub.s32 1, %v49_v12  ;;  %v97_v20 = vsub.s32 2, %v49_v12  ;;  %v113_v27 = vsub.s32 3, %v49_v12  ;;  %s229_s11 = sshll.u32 %s351_s2, 4  ;;  %s230_s11 = int_to_ptr.vmem [resolvable:$true] %s229_s11 }
  0x2b   :  { %v129_v30 = vsub.s32 4, %v49_v12  ;;  %v145_v37 = vsub.s32 5, %v49_v12  ;;  %v161_v50 = vsub.s32 6, %v49_v12  ;;  %v177_v61 = vsub.s32 7, %v49_v12  ;;  %s309_s12 = scalar_lea.vmem %s230_s11, 256  ;;  %p314_p3 = scmp.lt.s32.totalorder %s230_s11, %s230_s11 }
  0x2c   :  { %257 = vset.pattern.permute.xlu1 %v343_v3  ;;  %255 = vset.pattern.permute.xlu0 %v344_v4  ;;  %v66_v18 = vrot.slane %v42_v14, %v403_v13  ;;  %v70_v19 = vrot.slane %v43_v15, %v403_v13  ;;  %v51_v22 = vrot.slane %v46_v17, %v403_v13  ;;  %v45_v3 = vld [vmem:[#allocation5 + $0x18] sm:$0x3]  ;;  %p310_p2 = scmp.ne.s32.totalorder %s230_s11, %s309_s12  ;;  %p315_p4 = scmp.lt.s32.totalorder %s309_s12, %s309_s12 }
  0x2d   :  { %108 = vperm.xlu1 %257, %v41_v2   ;;  %76 = vperm.xlu0 %255, %v41_v2   ;;  %v55_v23 = vrot.slane %v46_v17, %v405_v16  ;;  %v82_v28 = vrot.slane %v42_v14, %v405_v16  ;;  %v86_v29 = vrot.slane %v43_v15, %v405_v16 }
  0x2e   :  { %v98_v31 = vrot.slane %v42_v14, %v97_v20  ;;  %v102_v32 = vrot.slane %v43_v15, %v97_v20  ;;  %v114_v38 = vrot.slane %v42_v14, %v113_v27  ;;  %v118_v39 = vrot.slane %v43_v15, %v113_v27  ;;  %p316_p5 = por %p315_p4, %p314_p3 }
  0x2f   :  { %v130_v42 = vrot.slane %v42_v14, %v129_v30  ;;  %v134_v43 = vrot.slane %v43_v15, %v129_v30  ;;  %v146_v48 = vrot.slane %v42_v14, %v145_v37  ;;  %v150_v49 = vrot.slane %v43_v15, %v145_v37 }
  0x30   :  { %v162_v0 = vrot.slane %v42_v14, %v161_v50  ;;  %v166_v1 = vrot.slane %v43_v15, %v161_v50  ;;  %p317_p6 = pnand %p316_p5, %p310_p2 }
  0x31   :  { %258 = vset.pattern.permute.xlu1 %v345_v5  ;;  %259 = vset.pattern.permute.xlu0 %v346_v6 }
  0x32   :  { %124 = vperm.xlu1 %258, %v41_v2   ;;  %140 = vperm.xlu0 %259, %v41_v2  }
  0x36   :  { %260 = vset.pattern.permute.xlu1 %v347_v7  ;;  %262 = vset.pattern.permute.xlu0 %v348_v8  ;;  %v178_v7 = vrot.slane %v42_v14, %v177_v61  ;;  %v182_v8 = vrot.slane %v43_v15, %v177_v61  ;;  %v214_v14 = vrot.slane %v45_v3, %v405_v16 }
  0x37   :  { %156 = vperm.xlu1 %260, %v41_v2   ;;  %188 = vperm.xlu0 %262, %v41_v2  }
  0x3b   :  { %261 = vset.pattern.permute.xlu1 %v349_v9  ;;  %264 = vset.pattern.permute.xlu0 %v350_v10 }
  0x3c   :  { %172 = vperm.xlu1 %261, %v41_v2  }
  0x40   :  { %263 = vset.pattern.permute.xlu1 %v350_v10  ;;  %v198_v10 = vrot.slane %v45_v3, %v403_v13 }
  0x41   :  { %204 = vperm.xlu1 %263, %v41_v2   ;;  %v44_v2 = vld [vmem:[#allocation5 + $0x10] sm:$0x3] }
  0x42   :  { %v194_v9 = vrot.slane %v44_v2, %v403_v13  ;;  %v210_v27 = vrot.slane %v44_v2, %v405_v16 }
  0xa7   :  { %v93_v21 = vpop.permute.xlu1 %92  ;;  %v61_v24 = vpop.permute.xlu0 %60 }
  0xa8   :  { %v71_v25 = vmul.f32 %v66_v18, %v61_v24  ;;  %v72_v26 = vmul.f32 %v70_v19, %v61_v24  ;;  %v103_v44 = vmul.f32 %v98_v31, %v93_v21  ;;  %v104_v45 = vmul.f32 %v102_v32, %v93_v21 }
  0xaa   :  { %v73_v33 = vadd.f32 %v71_v25, %v51_v22  ;;  %v74_v34 = vadd.f32 %v72_v26, %v55_v23 }
  0xac   :  { %v109_v35 = vpop.permute.xlu1 %108  ;;  %v77_v36 = vpop.permute.xlu0 %76 }
  0xad   :  { %v87_v40 = vmul.f32 %v82_v28, %v77_v36  ;;  %v88_v41 = vmul.f32 %v86_v29, %v77_v36  ;;  %v119_v51 = vmul.f32 %v114_v38, %v109_v35  ;;  %v120_v52 = vmul.f32 %v118_v39, %v109_v35 }
  0xaf   :  { %v89_v46 = vadd.f32 %v87_v40, %v73_v33  ;;  %v90_v47 = vadd.f32 %v88_v41, %v74_v34 }
  0xb1   :  { %v105_v53 = vadd.f32 %v103_v44, %v89_v46  ;;  %v106_v54 = vadd.f32 %v104_v45, %v90_v47  ;;  %v125_v55 = vpop.permute.xlu1 %124  ;;  %v141_v56 = vpop.permute.xlu0 %140 }
  0xb2   :  { %v135_v57 = vmul.f32 %v130_v42, %v125_v55  ;;  %v136_v58 = vmul.f32 %v134_v43, %v125_v55  ;;  %v151_v62 = vmul.f32 %v146_v48, %v141_v56  ;;  %v152_v63 = vmul.f32 %v150_v49, %v141_v56 }
  0xb3   :  { %v121_v59 = vadd.f32 %v119_v51, %v105_v53  ;;  %v122_v60 = vadd.f32 %v120_v52, %v106_v54 }
  0xb5   :  { %v137_v4 = vadd.f32 %v135_v57, %v121_v59  ;;  %v138_v5 = vadd.f32 %v136_v58, %v122_v60 }
  0xb6   :  { %v157_v6 = vpop.permute.xlu1 %156  ;;  %v189_v12 = vpop.permute.xlu0 %188 }
  0xb7   :  { %v153_v11 = vadd.f32 %v151_v62, %v137_v4  ;;  %v154_v17 = vadd.f32 %v152_v63, %v138_v5  ;;  %v167_v18 = vmul.f32 %v162_v0, %v157_v6  ;;  %v168_v19 = vmul.f32 %v166_v1, %v157_v6 }
  0xb8   :  { %v199_v21 = vmul.f32 %v194_v9, %v189_v12  ;;  %v200_v22 = vmul.f32 %v198_v10, %v189_v12 }
  0xb9   :  { %v169_v23 = vadd.f32 %v167_v18, %v153_v11  ;;  %v170_v24 = vadd.f32 %v168_v19, %v154_v17 }
  0xbb   :  { %v173_v20 = vpop.permute.xlu1 %172 }
  0xbc   :  { %v183_v25 = vmul.f32 %v178_v7, %v173_v20  ;;  %v184_v26 = vmul.f32 %v182_v8, %v173_v20 }
  0xbe   :  { %v185_v15 = vadd.f32 %v183_v25, %v169_v23  ;;  %v186_v28 = vadd.f32 %v184_v26, %v170_v24 }
  0xc0   :  { %v201_v29 = vadd.f32 %v199_v21, %v185_v15  ;;  %v202_v13 = vadd.f32 %v200_v22, %v186_v28  ;;  %v205_v30 = vpop.permute.xlu1 %204 }
  0xc1   :  { %v215_v31 = vmul.f32 %v210_v27, %v205_v30  ;;  %v216_v32 = vmul.f32 %v214_v14, %v205_v30 }
  0xc3   :  { %v217_v33 = vadd.f32 %v215_v31, %v201_v29  ;;  %v218_v34 = vadd.f32 %v216_v32, %v202_v13 }
  0xc5   :  { %v219_v35 = vmax.f32 %v217_v33, 0.0  ;;  %v220_v36 = vmax.f32 %v218_v34, 0.0 }
  0xc7   :  { %221 = vst [vmem:[#allocation7] sm:$0xff] %v219_v35  ;;  %222 = vst [vmem:[#allocation7 + $0x8] sm:$0xff] %v220_v36 }
  0xc8   :  { %320 = shalt.err (!%p317_p6)
}
  0xc9   :  { %s321_s15 = scalar_lea.hbm %s435_s3, 256 }
  0xca   :  { %p322_p7 = scmp.ne.s32.totalorder %s435_s3, %s321_s15  ;;  %p325_p8 = scmp.lt.u32.totalorder %s321_s15, %s435_s3 }
  0xcc   :  { %p327_p9 = pnand %p325_p8, %p322_p7 }
  0xce   :  { %330 = shalt.err (!%p327_p9)
}
  0xcf   :  { %232 = dma.vmem_to_hbm [thread:$0]  %s230_s11, 256, %s435_s3, [#allocation4]  }
  0xd0   :  { %335 = dma.done.wait [#allocation4], 256  }
  0xd1   :  { %336 = vsyncadd [#allocation4], 4294967040 }
  0xd2   :  { %236 = vsyncpa [#allocation3], 1 }
  0xd3   :  { %237 = vsyncpa [#allocation6], 1 }
  0xd4   :  { %238 = vsyncpa [#allocation4], 1 }

</bundles_post_ra>
